<compile_context>
chip_gen: v7x
topology: tpu7x:2x2x1
jax: 0.10.0
libtpu: 0.0.40
codegen_flags: <defaults>
</compile_context>

<pallas_src>
import functools

import jax
import jax.numpy as jnp
from jax.experimental import pallas as pl
from jax.experimental.pallas import tpu as pltpu

_LANE = 128
_SUBLANE = 16          # bf16 sublane packing: native bf16 tile is (16, 128)
_PALLAS_MIN_FLOPS = 5e7  # below this the kernel is launch/DMA-overhead bound


def _round_up(x, m):
    return (x + m - 1) // m * m


def _cdiv(a, b):
    return (a + b - 1) // b


def _vmem_cap_bytes():
    try:
        return int(pltpu.get_tpu_info().vmem_capacity_bytes)
    except Exception:
        return 64 << 20  # conservative (v7x per-TC physical VMEM)


def _tanh_in_bf16():
    # v5e's EUP/VPU has no bf16 path -> keep f32 tanh there.
    try:
        return "v5" not in jax.devices()[0].device_kind.lower()
    except Exception:
        return False


# --------------------------------------------------------------------------
# Kernel
# --------------------------------------------------------------------------
def _make_mlp_kernel(n_layers, tanh_bf16):
    """Fused MLP: tanh hidden layers, linear output, f32 accumulation."""

    def kernel(*refs):
        x_ref, o_ref = refs[0], refs[-1]
        w_refs = refs[1:-1:2]
        b_refs = refs[2:-1:2]
        # Fuse the f32 -> bf16 cast into the kernel (no wrapper HBM round trip).
        h = x_ref[...].astype(jnp.bfloat16)
        for li in range(n_layers):
            acc = (
                jnp.dot(h, w_refs[li][...], preferred_element_type=jnp.float32)
                + b_refs[li][...]
            )
            if li < n_layers - 1:
                if tanh_bf16:
                    # v6e/v7x: bf16 tanh halves EUP pushes (packed 2/lane).
                    h = jnp.tanh(acc.astype(jnp.bfloat16))
                else:
                    # v5e: f32-only EUP path.
                    h = jnp.tanh(acc).astype(jnp.bfloat16)
            else:
                o_ref[...] = acc.astype(o_ref.dtype)

    return kernel


# --------------------------------------------------------------------------
# One-time parameter preparation (padding + bf16 cast, cached by caller)
# --------------------------------------------------------------------------
def prepare_params(params):
    """Pad hidden widths to lane multiples and cast weights to bf16 ONCE.

    params: list of (W, b) with W (in, out) and b (1, out).
    Input features and output features stay un-padded (blocks whose last /
    second-last dim equals the full array dim are exempt from the (8,128) rule).
    Zero padding is mathematically inert (zero cols/rows, zero pad-bias,
    tanh(0)=0).
    """
    n_layers = len(params)
    dims = [params[0][0].shape[0]] + [w.shape[1] for (w, _) in params]
    pdims = list(dims)
    for i in range(1, n_layers):  # hidden widths only
        pdims[i] = _round_up(dims[i], _LANE)

    padded = []
    for li, (w, b) in enumerate(params):
        pin, pout = pdims[li], pdims[li + 1]
        w_p = (
            jnp.zeros((pin, pout), jnp.bfloat16)
            .at[: w.shape[0], : w.shape[1]]
            .set(w.astype(jnp.bfloat16))
        )
        b_p = (
            jnp.zeros((1, pout), jnp.float32)
            .at[:, : b.shape[1]]
            .set(b.astype(jnp.float32))
        )
        padded.append((w_p, b_p))

    return {"weights": padded, "dims": tuple(dims), "pdims": tuple(pdims)}


# --------------------------------------------------------------------------
# Tiling / VMEM sizing
# --------------------------------------------------------------------------
def _pick_tile_b(batch, target, weight_bytes):
    if weight_bytes > (20 << 20):
        target = min(target, 256)  # keep the live set inside v7x's 64 MiB VMEM
    n_tiles = max(1, _cdiv(batch, target))
    if n_tiles < 2 and batch >= 2 * _SUBLANE:
        n_tiles = 2  # give v7x's 2 TensorCores something to split (no-op on 1-TC)
    return max(_round_up(_cdiv(batch, n_tiles), _SUBLANE), _SUBLANE)


def _vmem_limit_bytes(tile_b, pdims, weight_bytes):
    in_tile = tile_b * pdims[0] * 4 * 2      # f32 x, double-buffered
    out_tile = tile_b * pdims[-1] * 4 * 2    # f32 out, double-buffered
    act = tile_b * max(pdims) * (4 + 2) * 2  # f32 acc + bf16 h, headroom x2
    need = int((weight_bytes + in_tile + out_tile + act) * 1.25) + (4 << 20)
    cap = int(_vmem_cap_bytes() * 0.9)
    return min(max(need, 32 << 20), cap)


# --------------------------------------------------------------------------
# Pallas forward (jitted; all shape metadata static)
# --------------------------------------------------------------------------
@functools.partial(
    jax.jit,
    static_argnames=("pdims", "tile_b", "tanh_bf16", "vmem_limit", "single_buffer"),
)
def _pallas_forward(x, flat_wb, *, pdims, tile_b, tanh_bf16, vmem_limit,
                    single_buffer):
    n_layers = len(pdims) - 1
    batch = x.shape[0]
    pbatch = _round_up(batch, tile_b)
    if pbatch != batch:
        x = jnp.pad(x, ((0, pbatch - batch), (0, 0)))
    grid = (pbatch // tile_b,)

    def _resident_spec(block_shape):
        # Grid-invariant operand: keep a single VMEM buffer (index never moves).
        if single_buffer:
            return pl.BlockSpec(block_shape, lambda i: (0, 0),
                                pipeline_mode=pl.Buffered(1))
        return pl.BlockSpec(block_shape, lambda i: (0, 0))

    in_specs = [pl.BlockSpec((tile_b, pdims[0]), lambda i: (i, 0))]
    for li in range(n_layers):
        pin, pout = pdims[li], pdims[li + 1]
        in_specs += [_resident_spec((pin, pout)), _resident_spec((1, pout))]
    out_spec = pl.BlockSpec((tile_b, pdims[-1]), lambda i: (i, 0))

    flops = 2 * pbatch * sum(pdims[i] * pdims[i + 1] for i in range(n_layers))
    transcendentals = pbatch * sum(pdims[1:-1])  # one tanh per hidden unit
    bytes_accessed = (
        pbatch * pdims[0] * 4                                        # x (f32)
        + sum(pdims[i] * pdims[i + 1] * 2 for i in range(n_layers))  # W (bf16)
        + sum(pdims[1:]) * 4                                         # biases
        + pbatch * pdims[-1] * 4                                     # out (f32)
    )

    out_p = pl.pallas_call(
        _make_mlp_kernel(n_layers, tanh_bf16),
        out_shape=jax.ShapeDtypeStruct((pbatch, pdims[-1]), jnp.float32),
        grid=grid,
        in_specs=in_specs,
        out_specs=out_spec,
        compiler_params=pltpu.CompilerParams(
            dimension_semantics=("parallel",),
            vmem_limit_bytes=vmem_limit,
        ),
        cost_estimate=pl.CostEstimate(
            flops=flops,
            transcendentals=transcendentals,
            bytes_accessed=bytes_accessed,
        ),
    )(x, *flat_wb)

    # Padded batch rows carry tanh(bias) garbage -> slice before anything uses it.
    return out_p if pbatch == batch else out_p[:batch]


@functools.partial(jax.jit, static_argnames=("n_layers",))
def _fallback_forward(x, flat_wb, n_layers):
    """Fused XLA path for launch-overhead-bound (tiny) problems."""
    h = x
    for li in range(n_layers):
        w, b = flat_wb[2 * li], flat_wb[2 * li + 1]
        h = jnp.dot(h.astype(jnp.bfloat16), w,
                    preferred_element_type=jnp.float32) + b
        if li < n_layers - 1:
            h = jnp.tanh(h)
    return h


# --------------------------------------------------------------------------
# Public entry point (== NSurrogatesModel.forward)
# --------------------------------------------------------------------------
def main_net_forward(x, prepared, *, target_tile_b=512, force_pallas=False):
    """main_net forward: fused, batch-pipelined Pallas MLP.

    x: (batch, n_surrog * input_size) float
    prepared: output of prepare_params(params)  (padded bf16 weights, cached)
    """
    if x.dtype != jnp.float32:
        x = x.astype(jnp.float32)
    batch = x.shape[0]
    pdims = prepared["pdims"]
    weights = prepared["weights"]
    n_layers = len(weights)
    flat_wb = tuple(a for wb in weights for a in wb)
    weight_bytes = sum(int(a.size) * a.dtype.itemsize for a in flat_wb)

    tile_b = _pick_tile_b(batch, target_tile_b, weight_bytes)
    pbatch = _round_up(batch, tile_b)
    flops = 2 * pbatch * sum(pdims[i] * pdims[i + 1] for i in range(n_layers))

    if not force_pallas and flops < _PALLAS_MIN_FLOPS:
        # Overhead-bound regime: a fused XLA dot beats the kernel launch + DMA.
        return _fallback_forward(x, flat_wb, n_layers)

    kwargs = dict(
        pdims=pdims,
        tile_b=tile_b,
        tanh_bf16=_tanh_in_bf16(),
        vmem_limit=_vmem_limit_bytes(tile_b, pdims, weight_bytes),
    )
    try:
        return _pallas_forward(x, flat_wb, single_buffer=True, **kwargs)
    except Exception:
        # Safety net: if this build rejects single-buffered (Buffered(1))
        # grid-invariant blocks, fall back to default double buffering.
        return _pallas_forward(x, flat_wb, single_buffer=False, **kwargs)


# --------------------------------------------------------------------------
# Reference / init
# --------------------------------------------------------------------------
def init_main_net_params(key, in_size, hidden_size, out_size):
    """PyTorch-default-style init: U(-1/sqrt(fan_in), +1/sqrt(fan_in))."""
    dims = (in_size,) + tuple(hidden_size) + (out_size,)
    params = []
    for fan_in, fan_out in zip(dims[:-1], dims[1:]):
        key, kw, kb = jax.random.split(key, 3)
        bound = 1.0 / jnp.sqrt(float(fan_in))
        w = jax.random.uniform(kw, (fan_in, fan_out), jnp.float32, -bound, bound)
        b = jax.random.uniform(kb, (1, fan_out), jnp.float32, -bound, bound)
        params.append((w, b))
    return params


def reference_forward(x, params):
    """Pure-JAX f32 reference of the same MLP."""
    h = x
    for li, (w, b) in enumerate(params):
        h = h @ w + b
        if li < len(params) - 1:
            h = jnp.tanh(h)
    return h


if __name__ == "__main__":
    # Module hyper-parameters (small, consistent with __init__ signature).
    input_size = 8      # per-surrogate input size
    output_size = 4
    hidden_size = (32, 32)
    n_surrog = 2
    batch = 2

    key = jax.random.PRNGKey(0)
    key, kx, kx2 = jax.random.split(key, 3)

    main_in = n_surrog * input_size            # main_net input dimension
    params = init_main_net_params(key, main_in, hidden_size, output_size)
    prepared = prepare_params(params)          # one-time pad + bf16 cast

    # --- 1) tiny batch: exercise the Pallas kernel explicitly -------------
    x = jax.random.normal(kx, (batch, main_in), dtype=jnp.float32)
    out = jax.block_until_ready(main_net_forward(x, prepared, force_pallas=True))
    ref = reference_forward(x, params)
    assert out.shape == (batch, output_size)
    assert jnp.allclose(out, ref, atol=5e-2, rtol=5e-2), float(
        jnp.max(jnp.abs(out - ref))
    )

    # Default dispatch at this size takes the fused-XLA fallback; check it too.
    out_fb = jax.block_until_ready(main_net_forward(x, prepared))
    assert jnp.allclose(out_fb, ref, atol=5e-2, rtol=5e-2)

    # --- 2) awkward batch: multi-tile grid + batch padding + slice ---------
    batch2 = 300
    x2 = jax.random.normal(kx2, (batch2, main_in), dtype=jnp.float32)
    out2 = jax.block_until_ready(main_net_forward(x2, prepared, force_pallas=True))
    ref2 = reference_forward(x2, params)
    assert out2.shape == (batch2, output_size)
    assert jnp.allclose(out2, ref2, atol=5e-2, rtol=5e-2), float(
        jnp.max(jnp.abs(out2 - ref2))
    )

    print("KERNEL_OK")
</pallas_src>

<mosaic_0001>
module attributes {stable_mosaic.version = 11 : i64} {
  func.func @kernel(%arg0: i32, %arg1: memref<16x16xf32, #tpu.memory_space<vmem>>, %arg2: memref<16x128xbf16, #tpu.memory_space<vmem>>, %arg3: memref<1x128xf32, #tpu.memory_space<vmem>>, %arg4: memref<128x128xbf16, #tpu.memory_space<vmem>>, %arg5: memref<1x128xf32, #tpu.memory_space<vmem>>, %arg6: memref<128x4xbf16, #tpu.memory_space<vmem>>, %arg7: memref<1x4xf32, #tpu.memory_space<vmem>>, %arg8: memref<16x4xf32, #tpu.memory_space<vmem>>) attributes {dimension_semantics = [#tpu.dimension_semantics<parallel>], iteration_bounds = array<i64: 1>, scalar_prefetch = 0 : i64, scratch_operands = 0 : i64, tpu.core_type = #tpu.core_type<tc>, window_params = [{transform_indices = @transform_0, window_bounds = array<i64: 16, 16>}, {pipeline_mode = #tpu.pipeline_mode<synchronous>, transform_indices = @transform_1, window_bounds = array<i64: 16, 128>}, {pipeline_mode = #tpu.pipeline_mode<synchronous>, transform_indices = @transform_2, window_bounds = array<i64: 1, 128>}, {pipeline_mode = #tpu.pipeline_mode<synchronous>, transform_indices = @transform_3, window_bounds = array<i64: 128, 128>}, {pipeline_mode = #tpu.pipeline_mode<synchronous>, transform_indices = @transform_4, window_bounds = array<i64: 1, 128>}, {pipeline_mode = #tpu.pipeline_mode<synchronous>, transform_indices = @transform_5, window_bounds = array<i64: 128, 4>}, {pipeline_mode = #tpu.pipeline_mode<synchronous>, transform_indices = @transform_6, window_bounds = array<i64: 1, 4>}, {transform_indices = @transform_7, window_bounds = array<i64: 16, 4>}]} {
    %c0 = arith.constant 0 : index
    %c0_0 = arith.constant 0 : index
    %0 = vector.load %arg1[%c0, %c0_0] : memref<16x16xf32, #tpu.memory_space<vmem>>, vector<16x16xf32>
    %1 = arith.truncf %0 : vector<16x16xf32> to vector<16x16xbf16>
    %c0_1 = arith.constant 0 : index
    %c0_2 = arith.constant 0 : index
    %2 = vector.load %arg2[%c0_1, %c0_2] : memref<16x128xbf16, #tpu.memory_space<vmem>>, vector<16x128xbf16>
    %cst = arith.constant dense<0.000000e+00> : vector<16x128xf32>
    %3 = tpu.matmul %1, %2, %cst {dimension_numbers = #tpu.dot_dimension_numbers<[1], [0], [0], [1], [0, 0, 1, 1], [], []>} : vector<16x16xbf16>, vector<16x128xbf16>, vector<16x128xf32> -> vector<16x128xf32>
    %c0_3 = arith.constant 0 : index
    %c0_4 = arith.constant 0 : index
    %4 = vector.load %arg3[%c0_3, %c0_4] : memref<1x128xf32, #tpu.memory_space<vmem>>, vector<1x128xf32>
    %5 = vector.broadcast %4 : vector<1x128xf32> to vector<16x128xf32>
    %6 = arith.addf %3, %5 : vector<16x128xf32>
    %7 = arith.truncf %6 : vector<16x128xf32> to vector<16x128xbf16>
    %8 = math.tanh %7 : vector<16x128xbf16>
    %c0_5 = arith.constant 0 : index
    %c0_6 = arith.constant 0 : index
    %9 = vector.load %arg4[%c0_5, %c0_6] : memref<128x128xbf16, #tpu.memory_space<vmem>>, vector<128x128xbf16>
    %cst_7 = arith.constant dense<0.000000e+00> : vector<16x128xf32>
    %10 = tpu.matmul %8, %9, %cst_7 {dimension_numbers = #tpu.dot_dimension_numbers<[1], [0], [0], [1], [0, 0, 1, 1], [], []>} : vector<16x128xbf16>, vector<128x128xbf16>, vector<16x128xf32> -> vector<16x128xf32>
    %c0_8 = arith.constant 0 : index
    %c0_9 = arith.constant 0 : index
    %11 = vector.load %arg5[%c0_8, %c0_9] : memref<1x128xf32, #tpu.memory_space<vmem>>, vector<1x128xf32>
    %12 = vector.broadcast %11 : vector<1x128xf32> to vector<16x128xf32>
    %13 = arith.addf %10, %12 : vector<16x128xf32>
    %14 = arith.truncf %13 : vector<16x128xf32> to vector<16x128xbf16>
    %15 = math.tanh %14 : vector<16x128xbf16>
    %c0_10 = arith.constant 0 : index
    %c0_11 = arith.constant 0 : index
    %16 = vector.load %arg6[%c0_10, %c0_11] : memref<128x4xbf16, #tpu.memory_space<vmem>>, vector<128x4xbf16>
    %cst_12 = arith.constant dense<0.000000e+00> : vector<16x4xf32>
    %17 = tpu.matmul %15, %16, %cst_12 {dimension_numbers = #tpu.dot_dimension_numbers<[1], [0], [0], [1], [0, 0, 1, 1], [], []>} : vector<16x128xbf16>, vector<128x4xbf16>, vector<16x4xf32> -> vector<16x4xf32>
    %c0_13 = arith.constant 0 : index
    %c0_14 = arith.constant 0 : index
    %18 = vector.load %arg7[%c0_13, %c0_14] : memref<1x4xf32, #tpu.memory_space<vmem>>, vector<1x4xf32>
    %19 = vector.broadcast %18 : vector<1x4xf32> to vector<16x4xf32>
    %20 = arith.addf %17, %19 : vector<16x4xf32>
    %c0_15 = arith.constant 0 : index
    %c0_16 = arith.constant 0 : index
    %21 = vector.load %arg8[%c0_15, %c0_16] : memref<16x4xf32, #tpu.memory_space<vmem>>, vector<16x4xf32>
    tpu.vector_store %arg8[%c0_15, %c0_16], %20 {strides = array<i32>} : memref<16x4xf32, #tpu.memory_space<vmem>>, vector<16x4xf32>,
    return
  }
  func.func @transform_0(%arg0: i32) -> (i32, i32) {
    %c0_i32 = arith.constant 0 : i32
    %c0_i32_0 = arith.constant 0 : i32
    return %arg0, %c0_i32 : i32, i32
  }
  func.func @transform_1(%arg0: i32) -> (i32, i32) {
    %c0_i32 = arith.constant 0 : i32
    %c0_i32_0 = arith.constant 0 : i32
    %c0_i32_1 = arith.constant 0 : i32
    return %c0_i32, %c0_i32_0 : i32, i32
  }
  func.func @transform_2(%arg0: i32) -> (i32, i32) {
    %c0_i32 = arith.constant 0 : i32
    %c0_i32_0 = arith.constant 0 : i32
    %c0_i32_1 = arith.constant 0 : i32
    return %c0_i32, %c0_i32_0 : i32, i32
  }
  func.func @transform_3(%arg0: i32) -> (i32, i32) {
    %c0_i32 = arith.constant 0 : i32
    %c0_i32_0 = arith.constant 0 : i32
    %c0_i32_1 = arith.constant 0 : i32
    return %c0_i32, %c0_i32_0 : i32, i32
  }
  func.func @transform_4(%arg0: i32) -> (i32, i32) {
    %c0_i32 = arith.constant 0 : i32
    %c0_i32_0 = arith.constant 0 : i32
    %c0_i32_1 = arith.constant 0 : i32
    return %c0_i32, %c0_i32_0 : i32, i32
  }
  func.func @transform_5(%arg0: i32) -> (i32, i32) {
    %c0_i32 = arith.constant 0 : i32
    %c0_i32_0 = arith.constant 0 : i32
    %c0_i32_1 = arith.constant 0 : i32
    return %c0_i32, %c0_i32_0 : i32, i32
  }
  func.func @transform_6(%arg0: i32) -> (i32, i32) {
    %c0_i32 = arith.constant 0 : i32
    %c0_i32_0 = arith.constant 0 : i32
    %c0_i32_1 = arith.constant 0 : i32
    return %c0_i32, %c0_i32_0 : i32, i32
  }
  func.func @transform_7(%arg0: i32) -> (i32, i32) {
    %c0_i32 = arith.constant 0 : i32
    %c0_i32_0 = arith.constant 0 : i32
    return %arg0, %c0_i32 : i32, i32
  }
}

module attributes {stable_mosaic.version = 11 : i64} {
  func.func @kernel(%arg0: i32, %arg1: memref<16x16xf32, #tpu.memory_space<vmem>>, %arg2: memref<16x128xbf16, #tpu.memory_space<vmem>>, %arg3: memref<1x128xf32, #tpu.memory_space<vmem>>, %arg4: memref<128x128xbf16, #tpu.memory_space<vmem>>, %arg5: memref<1x128xf32, #tpu.memory_space<vmem>>, %arg6: memref<128x4xbf16, #tpu.memory_space<vmem>>, %arg7: memref<1x4xf32, #tpu.memory_space<vmem>>, %arg8: memref<16x4xf32, #tpu.memory_space<vmem>>) attributes {dimension_semantics = [#tpu.dimension_semantics<parallel>], iteration_bounds = array<i64: 1>, scalar_prefetch = 0 : i64, scratch_operands = 0 : i64, tpu.core_type = #tpu.core_type<tc>, window_params = [{transform_indices = @transform_0, window_bounds = array<i64: 16, 16>}, {pipeline_mode = #tpu.pipeline_mode<synchronous>, transform_indices = @transform_1, window_bounds = array<i64: 16, 128>}, {pipeline_mode = #tpu.pipeline_mode<synchronous>, transform_indices = @transform_2, window_bounds = array<i64: 1, 128>}, {pipeline_mode = #tpu.pipeline_mode<synchronous>, transform_indices = @transform_3, window_bounds = array<i64: 128, 128>}, {pipeline_mode = #tpu.pipeline_mode<synchronous>, transform_indices = @transform_4, window_bounds = array<i64: 1, 128>}, {pipeline_mode = #tpu.pipeline_mode<synchronous>, transform_indices = @transform_5, window_bounds = array<i64: 128, 4>}, {pipeline_mode = #tpu.pipeline_mode<synchronous>, transform_indices = @transform_6, window_bounds = array<i64: 1, 4>}, {transform_indices = @transform_7, window_bounds = array<i64: 16, 4>}]} {
    %c0 = arith.constant 0 : index
    %c0_0 = arith.constant 0 : index
    %0 = vector.load %arg1[%c0, %c0_0] : memref<16x16xf32, #tpu.memory_space<vmem>>, vector<16x16xf32>
    %1 = arith.truncf %0 : vector<16x16xf32> to vector<16x16xbf16>
    %c0_1 = arith.constant 0 : index
    %c0_2 = arith.constant 0 : index
    %2 = vector.load %arg2[%c0_1, %c0_2] : memref<16x128xbf16, #tpu.memory_space<vmem>>, vector<16x128xbf16>
    %cst = arith.constant dense<0.000000e+00> : vector<16x128xf32>
    %3 = tpu.matmul %1, %2, %cst {dimension_numbers = #tpu.dot_dimension_numbers<[1], [0], [0], [1], [0, 0, 1, 1], [], []>} : vector<16x16xbf16>, vector<16x128xbf16>, vector<16x128xf32> -> vector<16x128xf32>
    %c0_3 = arith.constant 0 : index
    %c0_4 = arith.constant 0 : index
    %4 = vector.load %arg3[%c0_3, %c0_4] : memref<1x128xf32, #tpu.memory_space<vmem>>, vector<1x128xf32>
    %5 = vector.broadcast %4 : vector<1x128xf32> to vector<16x128xf32>
    %6 = arith.addf %3, %5 : vector<16x128xf32>
    %7 = arith.truncf %6 : vector<16x128xf32> to vector<16x128xbf16>
    %8 = math.tanh %7 : vector<16x128xbf16>
    %c0_5 = arith.constant 0 : index
    %c0_6 = arith.constant 0 : index
    %9 = vector.load %arg4[%c0_5, %c0_6] : memref<128x128xbf16, #tpu.memory_space<vmem>>, vector<128x128xbf16>
    %cst_7 = arith.constant dense<0.000000e+00> : vector<16x128xf32>
    %10 = tpu.matmul %8, %9, %cst_7 {dimension_numbers = #tpu.dot_dimension_numbers<[1], [0], [0], [1], [0, 0, 1, 1], [], []>} : vector<16x128xbf16>, vector<128x128xbf16>, vector<16x128xf32> -> vector<16x128xf32>
    %c0_8 = arith.constant 0 : index
    %c0_9 = arith.constant 0 : index
    %11 = vector.load %arg5[%c0_8, %c0_9] : memref<1x128xf32, #tpu.memory_space<vmem>>, vector<1x128xf32>
    %12 = vector.broadcast %11 : vector<1x128xf32> to vector<16x128xf32>
    %13 = arith.addf %10, %12 : vector<16x128xf32>
    %14 = arith.truncf %13 : vector<16x128xf32> to vector<16x128xbf16>
    %15 = math.tanh %14 : vector<16x128xbf16>
    %c0_10 = arith.constant 0 : index
    %c0_11 = arith.constant 0 : index
    %16 = vector.load %arg6[%c0_10, %c0_11] : memref<128x4xbf16, #tpu.memory_space<vmem>>, vector<128x4xbf16>
    %cst_12 = arith.constant dense<0.000000e+00> : vector<16x4xf32>
    %17 = tpu.matmul %15, %16, %cst_12 {dimension_numbers = #tpu.dot_dimension_numbers<[1], [0], [0], [1], [0, 0, 1, 1], [], []>} : vector<16x128xbf16>, vector<128x4xbf16>, vector<16x4xf32> -> vector<16x4xf32>
    %c0_13 = arith.constant 0 : index
    %c0_14 = arith.constant 0 : index
    %18 = vector.load %arg7[%c0_13, %c0_14] : memref<1x4xf32, #tpu.memory_space<vmem>>, vector<1x4xf32>
    %19 = vector.broadcast %18 : vector<1x4xf32> to vector<16x4xf32>
    %20 = arith.addf %17, %19 : vector<16x4xf32>
    %c0_15 = arith.constant 0 : index
    %c0_16 = arith.constant 0 : index
    %21 = vector.load %arg8[%c0_15, %c0_16] : memref<16x4xf32, #tpu.memory_space<vmem>>, vector<16x4xf32>
    tpu.vector_store %arg8[%c0_15, %c0_16], %20 {strides = array<i32>} : memref<16x4xf32, #tpu.memory_space<vmem>>, vector<16x4xf32>,
    return
  }
  func.func @transform_0(%arg0: i32) -> (i32, i32) {
    %c0_i32 = arith.constant 0 : i32
    %c0_i32_0 = arith.constant 0 : i32
    return %arg0, %c0_i32 : i32, i32
  }
  func.func @transform_1(%arg0: i32) -> (i32, i32) {
    %c0_i32 = arith.constant 0 : i32
    %c0_i32_0 = arith.constant 0 : i32
    %c0_i32_1 = arith.constant 0 : i32
    return %c0_i32, %c0_i32_0 : i32, i32
  }
  func.func @transform_2(%arg0: i32) -> (i32, i32) {
    %c0_i32 = arith.constant 0 : i32
    %c0_i32_0 = arith.constant 0 : i32
    %c0_i32_1 = arith.constant 0 : i32
    return %c0_i32, %c0_i32_0 : i32, i32
  }
  func.func @transform_3(%arg0: i32) -> (i32, i32) {
    %c0_i32 = arith.constant 0 : i32
    %c0_i32_0 = arith.constant 0 : i32
    %c0_i32_1 = arith.constant 0 : i32
    return %c0_i32, %c0_i32_0 : i32, i32
  }
  func.func @transform_4(%arg0: i32) -> (i32, i32) {
    %c0_i32 = arith.constant 0 : i32
    %c0_i32_0 = arith.constant 0 : i32
    %c0_i32_1 = arith.constant 0 : i32
    return %c0_i32, %c0_i32_0 : i32, i32
  }
  func.func @transform_5(%arg0: i32) -> (i32, i32) {
    %c0_i32 = arith.constant 0 : i32
    %c0_i32_0 = arith.constant 0 : i32
    %c0_i32_1 = arith.constant 0 : i32
    return %c0_i32, %c0_i32_0 : i32, i32
  }
  func.func @transform_6(%arg0: i32) -> (i32, i32) {
    %c0_i32 = arith.constant 0 : i32
    %c0_i32_0 = arith.constant 0 : i32
    %c0_i32_1 = arith.constant 0 : i32
    return %c0_i32, %c0_i32_0 : i32, i32
  }
  func.func @transform_7(%arg0: i32) -> (i32, i32) {
    %c0_i32 = arith.constant 0 : i32
    %c0_i32_0 = arith.constant 0 : i32
    return %arg0, %c0_i32 : i32, i32
  }
}

</mosaic_0001>

<bundles_post_ra>
// kernel: _pallas_forward.1
= control target key start
LH: loop header
LB: loop body
LE: loop exit
PB: predicated region body
PF: predicated region fallthrough
CT: control target
= control target key end

     0   :  { %v435_v0 = vmov 0.0   ;;  %vm436_vm0 = vmmov 0   ;;  %vm45_vm1 = vcmask 130048   ;;  %vm318_vm2 = vcmask 31744   ;;  %s569_s1 = inlined_call_operand.vmem [shape: bf16[16,128], index: 1, kind: input, shape index: {}]   ;;  %s570_s0 = inlined_call_operand.vmem [shape: f32[16,16], index: 0, kind: input, shape index: {}]   ;;  %s571_s3 = inlined_call_operand.vmem [shape: bf16[128,128], index: 3, kind: input, shape index: {}]   ;;  %s572_s5 = inlined_call_operand.vmem [shape: bf16[128,4], index: 5, kind: input, shape index: {}]   ;;  %s573_s2 = inlined_call_operand.vmem [shape: f32[1,128], index: 2, kind: input, shape index: {}]   ;;  %s574_s4 = inlined_call_operand.vmem [shape: f32[1,128], index: 4, kind: input, shape index: {}]   ;;  %s575_s6 = inlined_call_operand.vmem [shape: f32[1,4], index: 6, kind: input, shape index: {}]   ;;  %s576_s7 = inlined_call_operand.vmem [shape: f32[16,4], index: 7, kind: output, shape index: {}]  }
   0x1   :  { %366 = vmatprep.subr.bf16.mxu0 %v435_v0  ;;  %v414_v1 = vld [vmem:[%s569_s1] sm:$0xff]   ;;  %368 = vmatprep.mubr.msk.bf16.mxu0 %vm436_vm0, %v435_v0  ;;  %v28_v3 = vld [vmem:[%s570_s0 + $0x8] sm:$0xff]  ;;  %v417_v7 = vld [vmem:[%s571_s3 + $0x10] sm:$0xff]  }
   0x2   :  { %v27_v2 = vld [vmem:[%s570_s0] sm:$0xff]  ;;  %372 = vmatprep.subr.bf16.mxu1 %v435_v0  ;;  %388 = vmatprep.mubr.msk.bf16.mxu1 %vm436_vm0, %v435_v0  ;;  %v416_v6 = vld [vmem:[%s571_s3 + $0x8] sm:$0xff]   ;;  %v418_v8 = vld [vmem:[%s571_s3 + $0x18] sm:$0xff]  }
   0x3   :  { %367 = vmatpush3.bf16.msra.mxu0 %v414_v1  ;;  %v29_v4 = vpack.c.bf16 %v28_v3, %v27_v2  ;;  %v415_v5 = vld [vmem:[%s571_s3] sm:$0xff]   ;;  %v420_v10 = vld [vmem:[%s571_s3 + $0x28] sm:$0xff]   ;;  %v421_v11 = vld [vmem:[%s571_s3 + $0x30] sm:$0xff]  }
   0x4   :  { %392 = vmatprep.subr.bf16.mxu0 %v435_v0  ;;  %373 = vmatpush3.bf16.msra.mxu1 %v415_v5  ;;  %v419_v9 = vld [vmem:[%s571_s3 + $0x20] sm:$0xff]   ;;  %v422_v12 = vld [vmem:[%s571_s3 + $0x38] sm:$0xff]   ;;  %v424_v14 = vld [vmem:[%s572_s5 + $0x8] sm:$0xff]  }
   0x5   :  { %374 = vmatprep.subr.bf16.mxu1 %v435_v0  ;;  %v423_v13 = vld [vmem:[%s572_s5] sm:$0xff]   ;;  %v425_v15 = vld [vmem:[%s572_s5 + $0x10] sm:$0xff]   ;;  %v426_v25 = vld [vmem:[%s572_s5 + $0x18] sm:$0xff]  }
   0x6   :  { %369 = vmatmul.mubr.msk.bf16.vlgmr.msra.gmra.mrb[0].mxu0 %vm45_vm1, %v29_v4  ;;  %v325_v16 = vld [vmem:[%s573_s2] ss:$0 sm:$0xff]  ;;  %v428_v27 = vld [vmem:[%s572_s5 + $0x28] sm:$0xff]   ;;  %v429_v28 = vld [vmem:[%s572_s5 + $0x30] sm:$0xff]  }
   0x7   :  { %408 = vmatprep.mubr.msk.bf16.mxu0 %vm436_vm0, %v435_v0  ;;  %393 = vmatpush3.bf16.msra.mxu0 %v423_v13  ;;  %v427_v26 = vld [vmem:[%s572_s5 + $0x20] sm:$0xff]   ;;  %v430_v29 = vld [vmem:[%s572_s5 + $0x38] sm:$0xff]  }
   0x8   :  { %375 = vmatpush3.bf16.msra.mxu1 %v416_v6  ;;  %394 = vmatprep.subr.bf16.mxu0 %v435_v0  ;;  %v328_v30 = vld [vmem:[%s574_s4] ss:$0 sm:$0xff] }
   0x9   :  { %376 = vmatprep.subr.bf16.mxu1 %v435_v0  ;;  %v337_v39 = vld [vmem:[%s575_s6] ss:$0 sm:$0xff] }
   0xb   :  { %395 = vmatpush3.bf16.msra.mxu0 %v424_v14 }
   0xc   :  { %377 = vmatpush3.bf16.msra.mxu1 %v417_v7  ;;  %396 = vmatprep.subr.bf16.mxu0 %v435_v0 }
   0xd   :  { %378 = vmatprep.subr.bf16.mxu1 %v435_v0 }
   0xf   :  { %397 = vmatpush3.bf16.msra.mxu0 %v425_v15 }
  0x10   :  { %379 = vmatpush3.bf16.msra.mxu1 %v418_v8  ;;  %398 = vmatprep.subr.bf16.mxu0 %v435_v0 }
  0x11   :  { %380 = vmatprep.subr.bf16.mxu1 %v435_v0 }
  0x13   :  { %399 = vmatpush3.bf16.msra.mxu0 %v426_v25 }
  0x14   :  { %381 = vmatpush3.bf16.msra.mxu1 %v419_v9  ;;  %400 = vmatprep.subr.bf16.mxu0 %v435_v0 }
  0x15   :  { %382 = vmatprep.subr.bf16.mxu1 %v435_v0 }
  0x17   :  { %401 = vmatpush3.bf16.msra.mxu0 %v427_v26 }
  0x18   :  { %383 = vmatpush3.bf16.msra.mxu1 %v420_v10  ;;  %402 = vmatprep.subr.bf16.mxu0 %v435_v0 }
  0x19   :  { %384 = vmatprep.subr.bf16.mxu1 %v435_v0 }
  0x1b   :  { %403 = vmatpush3.bf16.msra.mxu0 %v428_v27 }
  0x1c   :  { %385 = vmatpush3.bf16.msra.mxu1 %v421_v11  ;;  %404 = vmatprep.subr.bf16.mxu0 %v435_v0 }
  0x1d   :  { %386 = vmatprep.subr.bf16.mxu1 %v435_v0 }
  0x1f   :  { %405 = vmatpush3.bf16.msra.mxu0 %v429_v28 }
  0x20   :  { %387 = vmatpush3.bf16.msra.mxu1 %v422_v12  ;;  %406 = vmatprep.subr.bf16.mxu0 %v435_v0 }
  0x23   :  { %407 = vmatpush3.bf16.msra.mxu0 %v430_v29 }
  0xd9   :  { %v83_v17 = vpop.f32.mrb[0].mxu0 }
  0xda   :  { %v370_v18 = vpop.f32.mrb[1].mxu0  ;;  %v84_v20 = vadd.f32 %v325_v16, %v83_v17 }
  0xdb   :  { %v86_v19 = vpop.f32.mrb[2].mxu0 }
  0xdc   :  { %v87_v21 = vadd.f32 %v325_v16, %v86_v19  ;;  %v371_v22 = vpop.f32.mrb[3].mxu0 }
  0xde   :  { %v90_v23 = vpack.c.bf16 %v87_v21, %v84_v20 }
  0xe0   :  { %431 = vtanh.bf16 %v90_v23 }
  0xeb   :  { %v432_v24 = vpop.eup %431 }
  0xec   :  { %389 = vmatmul.mubr.bf16.vlgmr.msra.gmra.mrb[0].mxu1 %v432_v24 }
 0x1bf   :  { %v197_v31 = vpop.f32.mrb[0].mxu1 }
 0x1c0   :  { %v390_v32 = vpop.f32.mrb[1].mxu1  ;;  %v198_v34 = vadd.f32 %v328_v30, %v197_v31 }
 0x1c1   :  { %v200_v33 = vpop.f32.mrb[2].mxu1 }
 0x1c2   :  { %v201_v35 = vadd.f32 %v328_v30, %v200_v33  ;;  %v391_v36 = vpop.f32.mrb[3].mxu1 }
 0x1c4   :  { %v204_v37 = vpack.c.bf16 %v201_v35, %v198_v34 }
 0x1c6   :  { %433 = vtanh.bf16 %v204_v37 }
 0x1d1   :  { %v434_v38 = vpop.eup %433 }
 0x1d2   :  { %409 = vmatmul.mubr.bf16.vlgmr.msra.gmra.mrb[4].mxu0 %v434_v38 }
 0x2a5   :  { %v311_v40 = vpop.f32.mrb[4].mxu0 }
 0x2a6   :  { %v312_v41 = vadd.f32 %v337_v39, %v311_v40  ;;  %v410_v42 = vpop.f32.mrb[5].mxu0 }
 0x2a7   :  { %v314_v43 = vpop.f32.mrb[6].mxu0 }
 0x2a8   :  { %319 = vst.msk [vmem:[%s576_s7] sm:$0xff] %vm318_vm2, %v312_v41  ;;  %v315_v44 = vadd.f32 %v337_v39, %v314_v43  ;;  %v411_v45 = vpop.f32.mrb[7].mxu0 }
 0x2aa   :  { %320 = vst.msk [vmem:[%s576_s7 + $0x8] sm:$0xff] %vm318_vm2, %v315_v44 }

// kernel: _pallas_forward.1
= control target key start
LH: loop header
LB: loop body
LE: loop exit
PB: predicated region body
PF: predicated region fallthrough
CT: control target
= control target key end

     0   :  { %v435_v0 = vmov 0.0   ;;  %vm436_vm0 = vmmov 0   ;;  %vm45_vm1 = vcmask 130048   ;;  %vm318_vm2 = vcmask 31744   ;;  %s569_s1 = inlined_call_operand.vmem [shape: bf16[16,128], index: 1, kind: input, shape index: {}]   ;;  %s570_s0 = inlined_call_operand.vmem [shape: f32[16,16], index: 0, kind: input, shape index: {}]   ;;  %s571_s3 = inlined_call_operand.vmem [shape: bf16[128,128], index: 3, kind: input, shape index: {}]   ;;  %s572_s5 = inlined_call_operand.vmem [shape: bf16[128,4], index: 5, kind: input, shape index: {}]   ;;  %s573_s2 = inlined_call_operand.vmem [shape: f32[1,128], index: 2, kind: input, shape index: {}]   ;;  %s574_s4 = inlined_call_operand.vmem [shape: f32[1,128], index: 4, kind: input, shape index: {}]   ;;  %s575_s6 = inlined_call_operand.vmem [shape: f32[1,4], index: 6, kind: input, shape index: {}]   ;;  %s576_s7 = inlined_call_operand.vmem [shape: f32[16,4], index: 7, kind: output, shape index: {}]  }
   0x1   :  { %366 = vmatprep.subr.bf16.mxu0 %v435_v0  ;;  %v414_v1 = vld [vmem:[%s569_s1] sm:$0xff]   ;;  %368 = vmatprep.mubr.msk.bf16.mxu0 %vm436_vm0, %v435_v0  ;;  %v28_v3 = vld [vmem:[%s570_s0 + $0x8] sm:$0xff]  ;;  %v417_v7 = vld [vmem:[%s571_s3 + $0x10] sm:$0xff]  }
   0x2   :  { %v27_v2 = vld [vmem:[%s570_s0] sm:$0xff]  ;;  %372 = vmatprep.subr.bf16.mxu1 %v435_v0  ;;  %388 = vmatprep.mubr.msk.bf16.mxu1 %vm436_vm0, %v435_v0  ;;  %v416_v6 = vld [vmem:[%s571_s3 + $0x8] sm:$0xff]   ;;  %v418_v8 = vld [vmem:[%s571_s3 + $0x18] sm:$0xff]  }
   0x3   :  { %367 = vmatpush3.bf16.msra.mxu0 %v414_v1  ;;  %v29_v4 = vpack.c.bf16 %v28_v3, %v27_v2  ;;  %v415_v5 = vld [vmem:[%s571_s3] sm:$0xff]   ;;  %v420_v10 = vld [vmem:[%s571_s3 + $0x28] sm:$0xff]   ;;  %v421_v11 = vld [vmem:[%s571_s3 + $0x30] sm:$0xff]  }
   0x4   :  { %392 = vmatprep.subr.bf16.mxu0 %v435_v0  ;;  %373 = vmatpush3.bf16.msra.mxu1 %v415_v5  ;;  %v419_v9 = vld [vmem:[%s571_s3 + $0x20] sm:$0xff]   ;;  %v422_v12 = vld [vmem:[%s571_s3 + $0x38] sm:$0xff]   ;;  %v424_v14 = vld [vmem:[%s572_s5 + $0x8] sm:$0xff]  }
   0x5   :  { %374 = vmatprep.subr.bf16.mxu1 %v435_v0  ;;  %v423_v13 = vld [vmem:[%s572_s5] sm:$0xff]   ;;  %v425_v15 = vld [vmem:[%s572_s5 + $0x10] sm:$0xff]   ;;  %v426_v25 = vld [vmem:[%s572_s5 + $0x18] sm:$0xff]  }
   0x6   :  { %369 = vmatmul.mubr.msk.bf16.vlgmr.msra.gmra.mrb[0].mxu0 %vm45_vm1, %v29_v4  ;;  %v325_v16 = vld [vmem:[%s573_s2] ss:$0 sm:$0xff]  ;;  %v428_v27 = vld [vmem:[%s572_s5 + $0x28] sm:$0xff]   ;;  %v429_v28 = vld [vmem:[%s572_s5 + $0x30] sm:$0xff]  }
   0x7   :  { %408 = vmatprep.mubr.msk.bf16.mxu0 %vm436_vm0, %v435_v0  ;;  %393 = vmatpush3.bf16.msra.mxu0 %v423_v13  ;;  %v427_v26 = vld [vmem:[%s572_s5 + $0x20] sm:$0xff]   ;;  %v430_v29 = vld [vmem:[%s572_s5 + $0x38] sm:$0xff]  }
   0x8   :  { %375 = vmatpush3.bf16.msra.mxu1 %v416_v6  ;;  %394 = vmatprep.subr.bf16.mxu0 %v435_v0  ;;  %v328_v30 = vld [vmem:[%s574_s4] ss:$0 sm:$0xff] }
   0x9   :  { %376 = vmatprep.subr.bf16.mxu1 %v435_v0  ;;  %v337_v39 = vld [vmem:[%s575_s6] ss:$0 sm:$0xff] }
   0xb   :  { %395 = vmatpush3.bf16.msra.mxu0 %v424_v14 }
   0xc   :  { %377 = vmatpush3.bf16.msra.mxu1 %v417_v7  ;;  %396 = vmatprep.subr.bf16.mxu0 %v435_v0 }
   0xd   :  { %378 = vmatprep.subr.bf16.mxu1 %v435_v0 }
   0xf   :  { %397 = vmatpush3.bf16.msra.mxu0 %v425_v15 }
  0x10   :  { %379 = vmatpush3.bf16.msra.mxu1 %v418_v8  ;;  %398 = vmatprep.subr.bf16.mxu0 %v435_v0 }
  0x11   :  { %380 = vmatprep.subr.bf16.mxu1 %v435_v0 }
  0x13   :  { %399 = vmatpush3.bf16.msra.mxu0 %v426_v25 }
  0x14   :  { %381 = vmatpush3.bf16.msra.mxu1 %v419_v9  ;;  %400 = vmatprep.subr.bf16.mxu0 %v435_v0 }
  0x15   :  { %382 = vmatprep.subr.bf16.mxu1 %v435_v0 }
  0x17   :  { %401 = vmatpush3.bf16.msra.mxu0 %v427_v26 }
  0x18   :  { %383 = vmatpush3.bf16.msra.mxu1 %v420_v10  ;;  %402 = vmatprep.subr.bf16.mxu0 %v435_v0 }
  0x19   :  { %384 = vmatprep.subr.bf16.mxu1 %v435_v0 }
  0x1b   :  { %403 = vmatpush3.bf16.msra.mxu0 %v428_v27 }
  0x1c   :  { %385 = vmatpush3.bf16.msra.mxu1 %v421_v11  ;;  %404 = vmatprep.subr.bf16.mxu0 %v435_v0 }
  0x1d   :  { %386 = vmatprep.subr.bf16.mxu1 %v435_v0 }
  0x1f   :  { %405 = vmatpush3.bf16.msra.mxu0 %v429_v28 }
  0x20   :  { %387 = vmatpush3.bf16.msra.mxu1 %v422_v12  ;;  %406 = vmatprep.subr.bf16.mxu0 %v435_v0 }
  0x23   :  { %407 = vmatpush3.bf16.msra.mxu0 %v430_v29 }
  0xd9   :  { %v83_v17 = vpop.f32.mrb[0].mxu0 }
  0xda   :  { %v370_v18 = vpop.f32.mrb[1].mxu0  ;;  %v84_v20 = vadd.f32 %v325_v16, %v83_v17 }
  0xdb   :  { %v86_v19 = vpop.f32.mrb[2].mxu0 }
  0xdc   :  { %v87_v21 = vadd.f32 %v325_v16, %v86_v19  ;;  %v371_v22 = vpop.f32.mrb[3].mxu0 }
  0xde   :  { %v90_v23 = vpack.c.bf16 %v87_v21, %v84_v20 }
  0xe0   :  { %431 = vtanh.bf16 %v90_v23 }
  0xeb   :  { %v432_v24 = vpop.eup %431 }
  0xec   :  { %389 = vmatmul.mubr.bf16.vlgmr.msra.gmra.mrb[0].mxu1 %v432_v24 }
 0x1bf   :  { %v197_v31 = vpop.f32.mrb[0].mxu1 }
 0x1c0   :  { %v390_v32 = vpop.f32.mrb[1].mxu1  ;;  %v198_v34 = vadd.f32 %v328_v30, %v197_v31 }
 0x1c1   :  { %v200_v33 = vpop.f32.mrb[2].mxu1 }
 0x1c2   :  { %v201_v35 = vadd.f32 %v328_v30, %v200_v33  ;;  %v391_v36 = vpop.f32.mrb[3].mxu1 }
 0x1c4   :  { %v204_v37 = vpack.c.bf16 %v201_v35, %v198_v34 }
 0x1c6   :  { %433 = vtanh.bf16 %v204_v37 }
 0x1d1   :  { %v434_v38 = vpop.eup %433 }
 0x1d2   :  { %409 = vmatmul.mubr.bf16.vlgmr.msra.gmra.mrb[4].mxu0 %v434_v38 }
 0x2a5   :  { %v311_v40 = vpop.f32.mrb[4].mxu0 }
 0x2a6   :  { %v312_v41 = vadd.f32 %v337_v39, %v311_v40  ;;  %v410_v42 = vpop.f32.mrb[5].mxu0 }
 0x2a7   :  { %v314_v43 = vpop.f32.mrb[6].mxu0 }
 0x2a8   :  { %319 = vst.msk [vmem:[%s576_s7] sm:$0xff] %vm318_vm2, %v312_v41  ;;  %v315_v44 = vadd.f32 %v337_v39, %v314_v43  ;;  %v411_v45 = vpop.f32.mrb[7].mxu0 }
 0x2aa   :  { %320 = vst.msk [vmem:[%s576_s7 + $0x8] sm:$0xff] %vm318_vm2, %v315_v44 }

</bundles_post_ra>
